<compile_context>
chip_gen: v6e
topology: v6e:2x2x1
jax: 0.10.0
libtpu: 0.0.40
codegen_flags: <defaults>
</compile_context>

<pallas_src>
import math

import jax
import jax.numpy as jnp
from jax.experimental import pallas as pl
from jax.experimental.pallas import tpu as pltpu

_LN_EPS = 1e-5     # torch.nn.LayerNorm default eps
_L2_EPS = 1e-12    # torch.nn.functional.normalize default eps


# ------------------------------ Pallas kernels ------------------------------

def _span_ln_kernel(start_ref, end_ref, lbias_ref, ws_ref, we_ref, gb_ref, o_ref):
    # start/end: (tile, Din)  lbias: (tile, Dout) f32  ws/we: (Din, Dout)
    # gb: (8, Dout) f32 with row0=gamma, row1=beta  o: (tile, Dout)
    y = jnp.dot(start_ref[...], ws_ref[...], preferred_element_type=jnp.float32)
    y = y + jnp.dot(end_ref[...], we_ref[...], preferred_element_type=jnp.float32)
    y = y + lbias_ref[...]
    inv_d = 1.0 / y.shape[-1]
    # Two independent cross-lane reductions (shorter XLU/VALU dep chain than
    # mean -> center -> mean(sq)); var = E[y^2] - mean^2, clamped at 0.
    mean = jnp.sum(y, axis=-1, keepdims=True) * inv_d
    ex2 = jnp.sum(y * y, axis=-1, keepdims=True) * inv_d
    var = jnp.maximum(ex2 - mean * mean, 0.0)
    inv = jax.lax.rsqrt(var + _LN_EPS)                      # per-row (tile, 1)
    gamma = gb_ref[0:1, :]
    beta = gb_ref[1:2, :]
    o_ref[...] = ((y - mean) * inv * gamma + beta).astype(o_ref.dtype)


def _span_l2_kernel(start_ref, end_ref, lbias_ref, ws_ref, we_ref, o_ref):
    # output='raw_norm' head: F.normalize(proj(span_rep), p=2, dim=-1)
    y = jnp.dot(start_ref[...], ws_ref[...], preferred_element_type=jnp.float32)
    y = y + jnp.dot(end_ref[...], we_ref[...], preferred_element_type=jnp.float32)
    y = y + lbias_ref[...]
    ss = jnp.sum(y * y, axis=-1, keepdims=True)
    inv = jax.lax.rsqrt(jnp.maximum(ss, _L2_EPS * _L2_EPS))  # == 1/max(||y||, eps)
    o_ref[...] = (y * inv).astype(o_ref.dtype)


# --------------------------- tiling / VMEM planning --------------------------

def _vmem_capacity_bytes():
    try:
        return int(pltpu.get_tpu_info().vmem_capacity_bytes)
    except Exception:
        return 64 << 20   # v7x-sized conservative fallback


def _plan_tiles(n_rows, d_in, d_out, x_item, out_item):
    """Row tile sized against the real VMEM footprint (incl. resident weights)."""
    cap = _vmem_capacity_bytes()
    budget = min(int(cap * 0.7), 96 << 20)           # headroom for the pipeline
    w_bytes = 2 * (2 * d_in * d_out * x_item)        # both weight halves, 2 bufs each
    p_bytes = 2 * (8 * d_out * 4)                    # merged gamma/beta block
    row_bytes = 2 * d_in * x_item + d_out * 4 + d_out * out_item
    avail = max(budget - w_bytes - p_bytes, 2 * 8 * row_bytes)

    align = 16 if x_item < 4 else 8                  # bf16 packs 16 rows / sublane tile
    tile = max(align, min((avail // (2 * row_bytes)) // align * align, 2048))
    if n_rows <= tile:
        if n_rows > 2 * align:
            # Two near-even blocks so both v7x TensorCores get work on the
            # "parallel" row axis (as even as row alignment allows).
            tile = min(tile, (((n_rows + 1) // 2 + align - 1) // align) * align)
        else:
            tile = n_rows                            # single block == full array dim

    footprint = w_bytes + p_bytes + 2 * tile * row_bytes
    vmem_limit = max(32 << 20, min(footprint + (8 << 20), int(cap * 0.9)))
    return int(tile), int(vmem_limit)


# ------------------------------ fused Pallas head ----------------------------

def _fused_span_head(start, end, len_bias, w_start, w_end, gb, output, out_dtype):
    n, d_in = start.shape
    d_out = w_start.shape[1]
    tile, vmem_limit = _plan_tiles(
        n, d_in, d_out, jnp.dtype(start.dtype).itemsize, jnp.dtype(out_dtype).itemsize)
    grid = (pl.cdiv(n, tile),)   # ragged last block handled by Pallas (no pad/slice)

    row = lambda width: pl.BlockSpec((tile, width), lambda i: (i, 0))
    resident = lambda shape: pl.BlockSpec(shape, lambda i: (0, 0))

    in_specs = [row(d_in), row(d_in), row(d_out),
                resident((d_in, d_out)), resident((d_in, d_out))]
    operands = [start, end, len_bias, w_start, w_end]
    if output == "layernorm":
        kernel = _span_ln_kernel
        in_specs.append(resident((8, d_out)))
        operands.append(gb)
    elif output == "raw_norm":
        kernel = _span_l2_kernel
    else:
        raise ValueError(f"unsupported output head: {output}")

    return pl.pallas_call(
        kernel,
        out_shape=jax.ShapeDtypeStruct((n, d_out), out_dtype),
        grid_spec=pltpu.PrefetchScalarGridSpec(
            num_scalar_prefetch=0,
            grid=grid,
            in_specs=in_specs,
            out_specs=pl.BlockSpec((tile, d_out), lambda i: (i, 0)),
        ),
        compiler_params=pltpu.CompilerParams(
            dimension_semantics=("parallel",),
            vmem_limit_bytes=vmem_limit,
        ),
    )(*operands)


def _plain_head(start, end, len_bias, w_start, w_end, gb, output, out_dtype):
    """Plain-XLA fallback for tiny / lane-sparse configs (same math)."""
    y = (jnp.dot(start, w_start, preferred_element_type=jnp.float32)
         + jnp.dot(end, w_end, preferred_element_type=jnp.float32) + len_bias)
    if output == "layernorm":
        mean = y.mean(-1, keepdims=True)
        var = ((y - mean) ** 2).mean(-1, keepdims=True)
        y = (y - mean) * jax.lax.rsqrt(var + _LN_EPS) * gb[0] + gb[1]
    elif output == "raw_norm":
        y = y * jax.lax.rsqrt(jnp.maximum(jnp.sum(y * y, -1, keepdims=True),
                                          _L2_EPS * _L2_EPS))
    else:
        raise ValueError(f"unsupported output head: {output}")
    return y.astype(out_dtype)


# --------------------------- SpanExtractor forward ---------------------------

def span_extractor_forward(params, word_repr, word_mask, gather_start, gather_end,
                           *, max_len=10, output="layernorm",
                           use_bf16_matmul=True, force_pallas=False):
    """Matches SpanExtractor.forward with dropout=0 (inference), default config.

    Heads implemented: 'layernorm' (default) and 'raw_norm'.
    """
    # TODO(synk): gelu / tanh / batchnorm / simple-layernorm heads and non-zero
    # dropout are not implemented in the fused kernel.
    assert word_repr.ndim == 2
    d_in = word_repr.shape[1]
    w = params["proj_w"]                              # (2*Din, Dout)
    d_out = w.shape[1]
    n = gather_start.shape[0]
    out_dtype = word_repr.dtype
    compute_dtype = jnp.bfloat16 if use_bf16_matmul else word_repr.dtype

    # Tiny data-dependent prep left to XLA: gathers, cumsum, table lookups.
    start = jnp.take(word_repr, gather_start, axis=0).astype(compute_dtype)
    end = jnp.take(word_repr, gather_end, axis=0).astype(compute_dtype)
    subword_len = jnp.clip(gather_end - gather_start + 1, 0, max_len)
    cs = jnp.cumsum(word_mask.astype(jnp.int32), axis=-1)
    word_len = jnp.clip(jnp.take(cs, gather_end) - jnp.take(cs, gather_start) + 1,
                        0, max_len)

    # Project the length-emb tables through W once (linearity => identical to
    # adding the embeddings before the projection), gather per span and fold in
    # the linear bias -> one streamed (N, Dout) f32 additive term. span_rep
    # itself is never materialized in HBM.
    wf = w.astype(jnp.float32)
    sub_proj = jnp.dot(params["subword_len_emb"].astype(jnp.float32), wf)
    wln_proj = jnp.dot(params["word_len_emb"].astype(jnp.float32), wf)
    len_bias = (jnp.take(sub_proj, subword_len, axis=0)
                + jnp.take(wln_proj, word_len, axis=0)
                + params["proj_b"].astype(jnp.float32))

    w_start = w[:d_in].astype(compute_dtype)
    w_end = w[d_in:].astype(compute_dtype)

    gb = None
    if output == "layernorm":
        gb = jnp.zeros((8, d_out), jnp.float32)        # padded to one sublane tile
        gb = gb.at[0].set(params["ln_gamma"].astype(jnp.float32))
        gb = gb.at[1].set(params["ln_beta"].astype(jnp.float32))

    # Tiny-N / narrow-Dout regime is overhead- and masked-store-bound in Pallas;
    # let XLA handle it unless forced.
    use_pallas = force_pallas or (n >= 64 and d_out % 128 == 0)
    head = _fused_span_head if use_pallas else _plain_head
    return head(start, end, len_bias, w_start, w_end, gb, output, out_dtype)


# ------------------------------- plain-JAX ref -------------------------------

def _reference(params, word_repr, word_mask, gs, ge, max_len, output):
    start, end = word_repr[gs], word_repr[ge]
    subword_len = jnp.clip(ge - gs + 1, 0, max_len)
    cs = jnp.cumsum(word_mask.astype(jnp.int32), axis=-1)
    word_len = jnp.clip(cs[ge] - cs[gs] + 1, 0, max_len)
    span = (jnp.concatenate([start, end], -1)
            + params["subword_len_emb"][subword_len]
            + params["word_len_emb"][word_len])
    y = jnp.dot(span, params["proj_w"],
                precision=jax.lax.Precision.HIGHEST) + params["proj_b"]
    if output == "layernorm":
        mean = y.mean(-1, keepdims=True)
        var = ((y - mean) ** 2).mean(-1, keepdims=True)
        return (y - mean) / jnp.sqrt(var + _LN_EPS) * params["ln_gamma"] + params["ln_beta"]
    return y / jnp.maximum(jnp.linalg.norm(y, axis=-1, keepdims=True), _L2_EPS)


if __name__ == "__main__":
    key = jax.random.PRNGKey(0)
    input_dim, output_dim, max_len = 64, 128, 10   # lane-dense Dout (multiple of 128)
    T = 64                                          # number of token rows in word_repr
    ks = jax.random.split(key, 12)

    word_repr = jax.random.normal(ks[0], (T, input_dim), jnp.float32)
    word_mask = (jax.random.uniform(ks[1], (T,)) > 0.3).astype(jnp.int32)

    # Parameters. (The PyTorch module zero-inits the length-embedding tables;
    # small random values exercise the add path -- forward semantics identical.)
    params = {
        "proj_w": jax.random.normal(ks[2], (2 * input_dim, output_dim),
                                    jnp.float32) / math.sqrt(2 * input_dim),
        "proj_b": 0.01 * jax.random.normal(ks[3], (output_dim,), jnp.float32),
        "ln_gamma": 1.0 + 0.05 * jax.random.normal(ks[4], (output_dim,), jnp.float32),
        "ln_beta": 0.05 * jax.random.normal(ks[5], (output_dim,), jnp.float32),
        "subword_len_emb": 0.02 * jax.random.normal(ks[6], (max_len + 1, 2 * input_dim), jnp.float32),
        "word_len_emb": 0.02 * jax.random.normal(ks[7], (max_len + 1, 2 * input_dim), jnp.float32),
    }

    def make_spans(k, n):
        k1, k2 = jax.random.split(k)
        gs = jax.random.randint(k1, (n,), 0, T, dtype=jnp.int32)
        ge = jnp.minimum(gs + jax.random.randint(k2, (n,), 0, 4, dtype=jnp.int32), T - 1)
        return gs, ge

    # (head, n_spans, key, use_bf16, force_pallas, tol)
    checks = [
        ("layernorm", 300, ks[8], True, False, 2.5e-2),   # bf16 MXU, 2 blocks + ragged
        ("layernorm", 300, ks[8], False, False, 1e-3),    # f32-operand Pallas path
        ("raw_norm", 200, ks[9], True, False, 2.5e-2),    # L2Scale output head
        ("layernorm", 12, ks[10], False, True, 1e-3),     # forced-Pallas tiny block
        ("layernorm", 12, ks[10], False, False, 1e-3),    # small-size XLA fallback
    ]

    for head, n, k, use_bf16, force, tol in checks:
        gs, ge = make_spans(k, n)
        y = span_extractor_forward(params, word_repr, word_mask, gs, ge,
                                   max_len=max_len, output=head,
                                   use_bf16_matmul=use_bf16, force_pallas=force)
        jax.block_until_ready(y)
        y_ref = _reference(params, word_repr, word_mask, gs, ge, max_len, head)
        assert y.shape == (n, output_dim) and y.dtype == word_repr.dtype
        err = jnp.max(jnp.abs(y - y_ref))
        assert jnp.allclose(y, y_ref, atol=tol, rtol=tol), \
            f"mismatch for {head} (bf16={use_bf16}, force={force}): max_err={err}"

    print("KERNEL_OK")
</pallas_src>

<mosaic_0001>
module attributes {stable_mosaic.version = 11 : i64} {
  func.func @_span_ln_kernel(%arg0: i32, %arg1: memref<160x64xbf16, #tpu.memory_space<vmem>>, %arg2: memref<160x64xbf16, #tpu.memory_space<vmem>>, %arg3: memref<160x128xf32, #tpu.memory_space<vmem>>, %arg4: memref<64x128xbf16, #tpu.memory_space<vmem>>, %arg5: memref<64x128xbf16, #tpu.memory_space<vmem>>, %arg6: memref<8x128xf32, #tpu.memory_space<vmem>>, %arg7: memref<160x128xf32, #tpu.memory_space<vmem>>) attributes {dimension_semantics = [#tpu.dimension_semantics<parallel>], iteration_bounds = array<i64: 2>, scalar_prefetch = 0 : i64, scratch_operands = 0 : i64, tpu.core_type = #tpu.core_type<tc>, window_params = [{transform_indices = @transform_0, window_bounds = array<i64: 160, 64>}, {transform_indices = @transform_1, window_bounds = array<i64: 160, 64>}, {transform_indices = @transform_2, window_bounds = array<i64: 160, 128>}, {pipeline_mode = #tpu.pipeline_mode<synchronous>, transform_indices = @transform_3, window_bounds = array<i64: 64, 128>}, {pipeline_mode = #tpu.pipeline_mode<synchronous>, transform_indices = @transform_4, window_bounds = array<i64: 64, 128>}, {pipeline_mode = #tpu.pipeline_mode<synchronous>, transform_indices = @transform_5, window_bounds = array<i64: 8, 128>}, {transform_indices = @transform_6, window_bounds = array<i64: 160, 128>}]} {
    %c0 = arith.constant 0 : index
    %c0_0 = arith.constant 0 : index
    %0 = vector.load %arg1[%c0, %c0_0] : memref<160x64xbf16, #tpu.memory_space<vmem>>, vector<160x64xbf16>
    %c0_1 = arith.constant 0 : index
    %c0_2 = arith.constant 0 : index
    %1 = vector.load %arg4[%c0_1, %c0_2] : memref<64x128xbf16, #tpu.memory_space<vmem>>, vector<64x128xbf16>
    %cst = arith.constant dense<0.000000e+00> : vector<160x128xf32>
    %2 = tpu.matmul %0, %1, %cst {dimension_numbers = #tpu.dot_dimension_numbers<[1], [0], [0], [1], [0, 0, 1, 1], [], []>} : vector<160x64xbf16>, vector<64x128xbf16>, vector<160x128xf32> -> vector<160x128xf32>
    %c0_3 = arith.constant 0 : index
    %c0_4 = arith.constant 0 : index
    %3 = vector.load %arg2[%c0_3, %c0_4] : memref<160x64xbf16, #tpu.memory_space<vmem>>, vector<160x64xbf16>
    %c0_5 = arith.constant 0 : index
    %c0_6 = arith.constant 0 : index
    %4 = vector.load %arg5[%c0_5, %c0_6] : memref<64x128xbf16, #tpu.memory_space<vmem>>, vector<64x128xbf16>
    %cst_7 = arith.constant dense<0.000000e+00> : vector<160x128xf32>
    %5 = tpu.matmul %3, %4, %cst_7 {dimension_numbers = #tpu.dot_dimension_numbers<[1], [0], [0], [1], [0, 0, 1, 1], [], []>} : vector<160x64xbf16>, vector<64x128xbf16>, vector<160x128xf32> -> vector<160x128xf32>
    %6 = arith.addf %2, %5 : vector<160x128xf32>
    %c0_8 = arith.constant 0 : index
    %c0_9 = arith.constant 0 : index
    %7 = vector.load %arg3[%c0_8, %c0_9] : memref<160x128xf32, #tpu.memory_space<vmem>>, vector<160x128xf32>
    %8 = arith.addf %6, %7 : vector<160x128xf32>
    %cst_10 = arith.constant dense<0.000000e+00> : vector<160xf32>
    %9 = vector.multi_reduction <add>, %8, %cst_10 [1] : vector<160x128xf32> to vector<160xf32>
    %10 = vector.shape_cast %9 : vector<160xf32> to vector<160x1xf32>
    %cst_11 = arith.constant 7.812500e-03 : f32
    %11 = vector.broadcast %cst_11 : f32 to vector<160x1xf32>
    %12 = arith.mulf %10, %11 : vector<160x1xf32>
    %13 = arith.mulf %8, %8 : vector<160x128xf32>
    %cst_12 = arith.constant dense<0.000000e+00> : vector<160xf32>
    %14 = vector.multi_reduction <add>, %13, %cst_12 [1] : vector<160x128xf32> to vector<160xf32>
    %15 = vector.shape_cast %14 : vector<160xf32> to vector<160x1xf32>
    %cst_13 = arith.constant 7.812500e-03 : f32
    %16 = vector.broadcast %cst_13 : f32 to vector<160x1xf32>
    %17 = arith.mulf %15, %16 : vector<160x1xf32>
    %18 = arith.mulf %12, %12 : vector<160x1xf32>
    %19 = arith.subf %17, %18 : vector<160x1xf32>
    %cst_14 = arith.constant 0.000000e+00 : f32
    %20 = vector.broadcast %cst_14 : f32 to vector<160x1xf32>
    %21 = arith.maximumf %19, %20 : vector<160x1xf32>
    %cst_15 = arith.constant 9.99999974E-6 : f32
    %22 = vector.broadcast %cst_15 : f32 to vector<160x1xf32>
    %23 = arith.addf %21, %22 : vector<160x1xf32>
    %24 = math.rsqrt %23 : vector<160x1xf32>
    %c0_16 = arith.constant 0 : index
    %c0_17 = arith.constant 0 : index
    %25 = vector.load %arg6[%c0_16, %c0_17] : memref<8x128xf32, #tpu.memory_space<vmem>>, vector<1x128xf32>
    %c1 = arith.constant 1 : index
    %c0_18 = arith.constant 0 : index
    %26 = vector.load %arg6[%c1, %c0_18] : memref<8x128xf32, #tpu.memory_space<vmem>>, vector<1x128xf32>
    %27 = vector.broadcast %12 : vector<160x1xf32> to vector<160x128xf32>
    %28 = arith.subf %8, %27 : vector<160x128xf32>
    %29 = vector.broadcast %24 : vector<160x1xf32> to vector<160x128xf32>
    %30 = arith.mulf %28, %29 : vector<160x128xf32>
    %31 = vector.broadcast %25 : vector<1x128xf32> to vector<160x128xf32>
    %32 = arith.mulf %30, %31 : vector<160x128xf32>
    %33 = vector.broadcast %26 : vector<1x128xf32> to vector<160x128xf32>
    %34 = arith.addf %32, %33 : vector<160x128xf32>
    %c0_19 = arith.constant 0 : index
    %c0_20 = arith.constant 0 : index
    %35 = vector.load %arg7[%c0_19, %c0_20] : memref<160x128xf32, #tpu.memory_space<vmem>>, vector<160x128xf32>
    tpu.vector_store %arg7[%c0_19, %c0_20], %34 {strides = array<i32>} : memref<160x128xf32, #tpu.memory_space<vmem>>, vector<160x128xf32>,
    return
  }
  func.func @transform_0(%arg0: i32) -> (i32, i32) {
    %c0_i32 = arith.constant 0 : i32
    %c0_i32_0 = arith.constant 0 : i32
    return %arg0, %c0_i32 : i32, i32
  }
  func.func @transform_1(%arg0: i32) -> (i32, i32) {
    %c0_i32 = arith.constant 0 : i32
    %c0_i32_0 = arith.constant 0 : i32
    return %arg0, %c0_i32 : i32, i32
  }
  func.func @transform_2(%arg0: i32) -> (i32, i32) {
    %c0_i32 = arith.constant 0 : i32
    %c0_i32_0 = arith.constant 0 : i32
    return %arg0, %c0_i32 : i32, i32
  }
  func.func @transform_3(%arg0: i32) -> (i32, i32) {
    %c0_i32 = arith.constant 0 : i32
    %c0_i32_0 = arith.constant 0 : i32
    %c0_i32_1 = arith.constant 0 : i32
    return %c0_i32, %c0_i32_0 : i32, i32
  }
  func.func @transform_4(%arg0: i32) -> (i32, i32) {
    %c0_i32 = arith.constant 0 : i32
    %c0_i32_0 = arith.constant 0 : i32
    %c0_i32_1 = arith.constant 0 : i32
    return %c0_i32, %c0_i32_0 : i32, i32
  }
  func.func @transform_5(%arg0: i32) -> (i32, i32) {
    %c0_i32 = arith.constant 0 : i32
    %c0_i32_0 = arith.constant 0 : i32
    %c0_i32_1 = arith.constant 0 : i32
    return %c0_i32, %c0_i32_0 : i32, i32
  }
  func.func @transform_6(%arg0: i32) -> (i32, i32) {
    %c0_i32 = arith.constant 0 : i32
    %c0_i32_0 = arith.constant 0 : i32
    return %arg0, %c0_i32 : i32, i32
  }
}

</mosaic_0001>

<bundles_post_ra>
// kernel: tpu_custom_call.1
= control target key start
LH: loop header
LB: loop body
LE: loop exit
PB: predicated region body
PF: predicated region fallthrough
CT: control target
= control target key end

     0   :  { %11 = vsyncpa [#allocation3], 0  ;;  %s2215_s0 = inlined_call_operand.vmem [shape: bf16[300,64], index: 0, kind: input, shape index: {}]   ;;  %s2216_s1 = inlined_call_operand.vmem [shape: bf16[300,64], index: 1, kind: input, shape index: {}]   ;;  %s2217_s2 = inlined_call_operand.vmem [shape: f32[300,128], index: 2, kind: input, shape index: {}]   ;;  %s2218_s3 = inlined_call_operand.vmem [shape: bf16[64,128], index: 3, kind: input, shape index: {}]   ;;  %s2219_s4 = inlined_call_operand.vmem [shape: bf16[64,128], index: 4, kind: input, shape index: {}]   ;;  %s2220_s5 = inlined_call_operand.vmem [shape: f32[8,128], index: 5, kind: input, shape index: {}]   ;;  %s2221_s6 = inlined_call_operand.hbm [shape: f32[300,128], index: 6, kind: output, shape index: {}]  }
   0x1   :  { %13 = vsyncpa [#allocation3 + $0x1], 0  ;;  %s1707_s21 = smov 0   ;;  %s1709_s22 = smov 0  }
   0x2   :  { %s1711_s23 = smov 0   ;;  %s1713_s24 = smov 0  }
   0x3 LB: > { %s1728_s25 = sadd.s32 4294967295, %s1667_s24   ;;  %s1349_s26 = sadd.s32 4294967294, %s1667_s24   ;;  %s1667_s24 = sphi %s1713_s24, %s2227_s24   ;;  %s1663_s23 = sphi %s1711_s23, %s2226_s23   ;;  %s1659_s22 = sphi %s1709_s22, %s2225_s22   ;;  %s1655_s21 = sphi %s1707_s21, %s2224_s21  }
   0x4   : > { %s1732_s27 = sadd.s32 1, %s1667_s24   ;;  %s167_s28 = sadd.s32 1, %s1663_s23 }
   0x5   : > { %s164_s29 = ssub.s32 %s1667_s24, %s1732_s27  ;;  %p177_p0 = scmp.ne.s32.totalorder %s1663_s23, %s1659_s22 }
   0x6   : > { %p165_p1 = scmp.eq.s32.totalorder %s164_s29, 0  ;;  %p178_p2 = scmp.eq.s32.totalorder %s1728_s25, 1 }
   0x7   : > { %p183_p3 = scmp.ne.s32.totalorder %s1659_s22, %s1655_s21  ;;  %p184_p4 = scmp.eq.s32.totalorder %s1349_s26, 1 }
   0x8   : > { %s1743_s30 = scalar_select %p165_p1, %s1663_s23, %s167_s28  }
   0x9   : > { %p1745_p5 = por %p178_p2, %p177_p0  ;;  %p1749_p6 = por %p184_p4, %p183_p3 }
   0xa   : > { %p1352_p7 = scmp.ge.s32.totalorder %s1667_s24, 1  ;;  %p262_p8 = scmp.lt.s32.totalorder %s1667_s24, 3 }
   0xc   : > { %p263_p9 = pnand %p1352_p7, %p262_p8 }
   0xd   : > { %s1759_s11 = smul.u32 (!%p263_p9), 20, %s1728_s25 }
   0xe   : > { %266 = sbr.rel (%p263_p9) target bundleno = 507 (0x1fb), region = 44 }
   0xf   : > { %p319_p10 = scmp.lt.s32.totalorder (!%p263_p9), %s1759_s11, 37 }
  0x13   : > { %v1539_v0 = vld [vmem:[%s2219_s4 + $0x18] sm:$0xff]   ;;  %v1541_v2 = vld [vmem:[%s2219_s4 + $0x10] sm:$0xff]   ;;  %v1543_v4 = vld [vmem:[%s2219_s4 + $0x8] sm:$0xff]   ;;  %s1775_s20 = scalar_select %p319_p10, %s1759_s11, 37  ;;  %vm492_vm0 = vcmask 523264  }
  0x14   : > { %v1540_v1 = vld [vmem:[%s2218_s3 + $0x18] sm:$0xff]   ;;  %1442 = vmatprep.subr.bf16.mxu0 %v1539_v0  ;;  %v1542_v3 = vld [vmem:[%s2218_s3 + $0x10] sm:$0xff]   ;;  %v1544_v5 = vld [vmem:[%s2218_s3 + $0x8] sm:$0xff]   ;;  %s1252_s18 = ssub.s32 (%p1745_p5), 38, %s1759_s11 }
  0x15   : > { %1470 = vmatprep.subr.bf16.mxu1 %v1540_v1  ;;  %1443 = vmatpush3.bf16.msra.mxu0 %v1539_v0  ;;  %v1545_v6 = vld [vmem:[%s2219_s4] sm:$0xff]   ;;  %s1353_s10 = sshll.u32 %s1775_s20, 2  ;;  %s1355_s26 = sshll.u32 %s1775_s20, 3 }
  0x16   : > { %1471 = vmatpush3.bf16.msra.mxu1 %v1540_v1  ;;  %1444 = vmatprep.subr.bf16.mxu0 %v1541_v2  ;;  %v1546_v7 = vld [vmem:[%s2218_s3] sm:$0xff]   ;;  %s1790_s16 = scalar_lea.vmem %s2216_s1, %s1353_s10  ;;  %s1795_s19 = scalar_lea.vmem %s2215_s0, %s1353_s10 }
  0x17   : > { %1472 = vmatprep.subr.bf16.mxu1 %v1542_v3  ;;  %v1547_v8 = vld [vmem:[%s1790_s16] sm:$0xff]   ;;  %v1549_v10 = vld [vmem:[%s1790_s16 + $0x8] sm:$0xff]   ;;  %v1551_v12 = vld [vmem:[%s1790_s16 + $0x10] sm:$0xff]   ;;  %s1841_s9 = scalar_lea.vmem %s2217_s2, %s1355_s26  ;;  %s311_s20 = sand.u32 1, %s1659_s22  }
  0x18   : > { %v1548_v9 = vld [vmem:[%s1795_s19] sm:$0xff]   ;;  %1450 = vmatprep.mubr.msk.bf16.mxu0 %vm492_vm0, %v1547_v8  ;;  %v1550_v11 = vld [vmem:[%s1795_s19 + $0x8] sm:$0xff]   ;;  %v1552_v13 = vld [vmem:[%s1795_s19 + $0x10] sm:$0xff]   ;;  %s1498_s13 = smul.u32 160, %s311_s20  ;;  %s2155_s17 = scalar_lea.sflag [#allocation3], %s311_s20 }
  0x19   : > { %1445 = vmatpush3.bf16.msra.mxu0 %v1541_v2  ;;  %1478 = vmatprep.mubr.msk.bf16.mxu1 %vm492_vm0, %v1548_v9  ;;  %v1553_v14 = vld [vmem:[%s1790_s16 + $0x18] sm:$0xff]   ;;  %v1555_v16 = vld [vmem:[%s1790_s16 + $0x20] sm:$0xff]   ;;  %v1557_v18 = vld [vmem:[%s1790_s16 + $0x28] sm:$0xff]   ;;  %p1253_p11 = scmp.lt.s32.totalorder (%p1745_p5), %s1252_s18, 20 }
  0x1a   : > { %1473 = vmatpush3.bf16.msra.mxu1 %v1542_v3  ;;  %1446 = vmatprep.subr.bf16.mxu0 %v1543_v4  ;;  %v1554_v15 = vld [vmem:[%s1795_s19 + $0x18] sm:$0xff]   ;;  %v1556_v17 = vld [vmem:[%s1795_s19 + $0x20] sm:$0xff]   ;;  %v1558_v19 = vld [vmem:[%s1795_s19 + $0x28] sm:$0xff]  }
  0x1b   : > { %1474 = vmatprep.subr.bf16.mxu1 %v1544_v5  ;;  %v1559_v20 = vld [vmem:[%s1790_s16 + $0x30] sm:$0xff]   ;;  %v1561_v22 = vld [vmem:[%s1790_s16 + $0x38] sm:$0xff]   ;;  %v1563_v24 = vld [vmem:[%s1790_s16 + $0x40] sm:$0xff]  }
  0x1c   : > { %v1560_v21 = vld [vmem:[%s1795_s19 + $0x30] sm:$0xff]   ;;  %v1562_v23 = vld [vmem:[%s1795_s19 + $0x38] sm:$0xff]   ;;  %v1564_v25 = vld [vmem:[%s1795_s19 + $0x40] sm:$0xff]  }
  0x1d   : > { %1447 = vmatpush3.bf16.msra.mxu0 %v1543_v4  ;;  %v1565_v26 = vld [vmem:[%s1790_s16 + $0x48] sm:$0xff]   ;;  %v855_v30 = vld [vmem:[%s1841_s9 + $0x10] sm:$0xff]  ;;  %v853_v34 = vld [vmem:[%s1841_s9] sm:$0xff]  ;;  %s2012_s16 = scalar_lea.vmem [#allocation2], %s1498_s13 }
  0x1e   : > { %1475 = vmatpush3.bf16.msra.mxu1 %v1544_v5  ;;  %1448 = vmatprep.subr.bf16.mxu0 %v1545_v6  ;;  %v1566_v27 = vld [vmem:[%s1795_s19 + $0x48] sm:$0xff]   ;;  %v856_v39 = vld [vmem:[%s1841_s9 + $0x18] sm:$0xff]  ;;  %v859_v63 = vld [vmem:[%s1841_s9 + $0x30] sm:$0xff] }
  0x1f   : > { %1476 = vmatprep.subr.bf16.mxu1 %v1546_v7  ;;  %v854_v47 = vld [vmem:[%s1841_s9 + $0x8] sm:$0xff]  ;;  %v860_v59 = vld [vmem:[%s1841_s9 + $0x38] sm:$0xff] }
  0x20   : > { %v858_v2 = vld [vmem:[%s1841_s9 + $0x28] sm:$0xff] }
  0x21   : > { %1449 = vmatpush3.bf16.msra.mxu0 %v1545_v6 }
  0x22   : > { %1477 = vmatpush3.bf16.msra.mxu1 %v1546_v7  ;;  %v857_v7 = vld [vmem:[%s1841_s9 + $0x20] sm:$0xff] }
  0x24   : > { %1451 = vmatmul.mubr.msk.bf16.vlgmr.msra.gmra.mxu0 %vm492_vm0, %v1549_v10 }
  0x25   : > { %1479 = vmatmul.mubr.msk.bf16.vlgmr.msra.gmra.mxu1 %vm492_vm0, %v1550_v11  ;;  %1454 = vmatprep.mubr.msk.bf16.mxu0 %vm492_vm0, %v1551_v12 }
  0x26   : > { %1482 = vmatprep.mubr.msk.bf16.mxu1 %vm492_vm0, %v1552_v13 }
  0x2c   : > { %1455 = vmatmul.mubr.msk.bf16.gmra.mxu0 %vm492_vm0, %v1553_v14 }
  0x2d   : > { %1483 = vmatmul.mubr.msk.bf16.gmra.mxu1 %vm492_vm0, %v1554_v15  ;;  %1458 = vmatprep.mubr.msk.bf16.mxu0 %vm492_vm0, %v1555_v16 }
  0x2e   : > { %1486 = vmatprep.mubr.msk.bf16.mxu1 %vm492_vm0, %v1556_v17 }
  0x34   : > { %1459 = vmatmul.mubr.msk.bf16.gmra.mxu0 %vm492_vm0, %v1557_v18  ;;  %v864_v18 = vld [vmem:[%s1841_s9 + $0x58] sm:$0xff] }
  0x35   : > { %1487 = vmatmul.mubr.msk.bf16.gmra.mxu1 %vm492_vm0, %v1558_v19  ;;  %1462 = vmatprep.mubr.msk.bf16.mxu0 %vm492_vm0, %v1559_v20 }
  0x36   : > { %1490 = vmatprep.mubr.msk.bf16.mxu1 %vm492_vm0, %v1560_v21 }
  0x3c   : > { %1463 = vmatmul.mubr.msk.bf16.gmra.mxu0 %vm492_vm0, %v1561_v22 }
  0x3d   : > { %1491 = vmatmul.mubr.msk.bf16.gmra.mxu1 %vm492_vm0, %v1562_v23  ;;  %1466 = vmatprep.mubr.msk.bf16.mxu0 %vm492_vm0, %v1563_v24  ;;  %v863_v23 = vld [vmem:[%s1841_s9 + $0x50] sm:$0xff] }
  0x3e   : > { %1494 = vmatprep.mubr.msk.bf16.mxu1 %vm492_vm0, %v1564_v25 }
  0x44   : > { %1467 = vmatmul.mubr.msk.bf16.gmra.mxu0 %vm492_vm0, %v1565_v26  ;;  %v862_v26 = vld [vmem:[%s1841_s9 + $0x48] sm:$0xff] }
  0x45   : > { %1495 = vmatmul.mubr.msk.bf16.gmra.mxu1 %vm492_vm0, %v1566_v27 }
  0xe4   : > { %v1452_v28 = vpop.f32.mrf.mxu0 }
  0xe5   : > { %v1480_v29 = vpop.f32.mrf.mxu1 }
  0xe6   : > { %v783_v31 = vadd.f32 %v1480_v29, %v1452_v28  ;;  %v557_v32 = vpop.f32.mrf.mxu0 }
  0xe7   : > { %v774_v33 = vpop.f32.mrf.mxu1 }
  0xe8   : > { %v1845_v35 = vadd.f32 %v855_v30, %v783_v31  ;;  %v775_v36 = vadd.f32 %v774_v33, %v557_v32  ;;  %v1453_v37 = vpop.f32.mrf.mxu0  ;;  %v861_v31 = vld [vmem:[%s1841_s9 + $0x40] sm:$0xff] }
  0xe9   : > { %v1481_v38 = vpop.f32.mrf.mxu1 }
  0xea   : > { %v1848_v40 = vadd.f32 %v853_v34, %v775_v36  ;;  %v786_v41 = vadd.f32 %v1481_v38, %v1453_v37  ;;  %897 = vadd.xlane.f32.xlu1 %v1845_v35  ;;  %v560_v42 = vpop.f32.mrf.mxu0  ;;  %v955_v50 = vmul.f32 %v1845_v35, %v1845_v35 }
  0xeb   : > { %v777_v43 = vpop.f32.mrf.mxu1 }
  0xec   : > { %v1851_v44 = vadd.f32 %v856_v39, %v786_v41  ;;  %v778_v45 = vadd.f32 %v777_v43, %v560_v42  ;;  %893 = vadd.xlane.f32.xlu0 %v1848_v40  ;;  %v1456_v46 = vpop.f32.mrf.mxu0  ;;  %v953_v56 = vmul.f32 %v1848_v40, %v1848_v40 }
  0xed   : > { %v1484_v48 = vpop.f32.mrf.mxu1 }
  0xee   : > { %899 = vadd.xlane.f32.xlu1 %v1851_v44  ;;  %v573_v49 = vpop.f32.mrf.mxu0  ;;  %v1858_v52 = vadd.f32 %v854_v47, %v778_v45  ;;  %v956_v53 = vmul.f32 %v1851_v44, %v1851_v44  ;;  %v799_v62 = vadd.f32 %v1484_v48, %v1456_v46  ;;  %v868_v45 = vld [vmem:[%s1841_s9 + $0x78] sm:$0xff] }
  0xef   : > { %v790_v51 = vpop.f32.mrf.mxu1 }
  0xf0   : > { %977 = vadd.xlane.f32.xlu0 %v955_v50  ;;  %v1457_v54 = vpop.f32.mrf.mxu0  ;;  %v954_v58 = vmul.f32 %v1858_v52, %v1858_v52  ;;  %v1872_v5 = vadd.f32 %v859_v63, %v799_v62  ;;  %v791_v6 = vadd.f32 %v790_v51, %v573_v49  ;;  %v867_v50 = vld [vmem:[%s1841_s9 + $0x70] sm:$0xff] }
  0xf1   : > { %v1485_v55 = vpop.f32.mrf.mxu1 }
  0xf2   : > { %979 = vadd.xlane.f32.xlu1 %v956_v53  ;;  %v802_v57 = vadd.f32 %v1485_v55, %v1457_v54  ;;  %v576_v60 = vpop.f32.mrf.mxu0  ;;  %v1879_v11 = vadd.f32 %v857_v7, %v791_v6  ;;  %v959_v15 = vmul.f32 %v1872_v5, %v1872_v5  ;;  %v866_v54 = vld [vmem:[%s1841_s9 + $0x68] sm:$0xff] }
  0xf3   : > { %v793_v61 = vpop.f32.mrf.mxu1 }
  0xf4   : > { %973 = vadd.xlane.f32.xlu0 %v953_v56  ;;  %v1868_v0 = vadd.f32 %v860_v59, %v802_v57  ;;  %v794_v1 = vadd.f32 %v793_v61, %v576_v60  ;;  %v1460_v3 = vpop.f32.mrf.mxu0  ;;  %v957_v22 = vmul.f32 %v1879_v11, %v1879_v11  ;;  %v865_v59 = vld [vmem:[%s1841_s9 + $0x60] sm:$0xff] }
  0xf5   : > { %v1488_v4 = vpop.f32.mrf.mxu1 }
  0xf6   : > { %975 = vadd.xlane.f32.xlu1 %v954_v58  ;;  %v1876_v8 = vadd.f32 %v858_v2, %v794_v1  ;;  %v589_v9 = vpop.f32.mrf.mxu0  ;;  %v960_v12 = vmul.f32 %v1868_v0, %v1868_v0  ;;  %v815_v21 = vadd.f32 %v1488_v4, %v1460_v3 }
  0xf7   : > { %v806_v10 = vpop.f32.mrf.mxu1 }
  0xf8   : > { %895 = vadd.xlane.f32.xlu0 %v1858_v52  ;;  %v1461_v13 = vpop.f32.mrf.mxu0  ;;  %v958_v17 = vmul.f32 %v1876_v8, %v1876_v8  ;;  %v1896_v29 = vadd.f32 %v863_v23, %v815_v21  ;;  %v807_v30 = vadd.f32 %v806_v10, %v589_v9  ;;  %v872_v9 = vld [vmem:[%s1841_s9 + $0x98] sm:$0xff]  ;;  %v869_v21 = vld [vmem:[%s1841_s9 + $0x80] sm:$0xff] }
  0xf9   : > { %v1489_v14 = vpop.f32.mrf.mxu1 }
  0xfa   : > { %907 = vadd.xlane.f32.xlu1 %v1868_v0  ;;  %v818_v16 = vadd.f32 %v1489_v14, %v1461_v13  ;;  %v592_v19 = vpop.f32.mrf.mxu0  ;;  %v1903_v36 = vadd.f32 %v861_v31, %v807_v30  ;;  %v963_v41 = vmul.f32 %v1896_v29, %v1896_v29 }
  0xfb   : > { %v809_v20 = vpop.f32.mrf.mxu1 }
  0xfc   : > { %905 = vadd.xlane.f32.xlu0 %v1872_v5  ;;  %v1893_v24 = vadd.f32 %v864_v18, %v818_v16  ;;  %v810_v25 = vadd.f32 %v809_v20, %v592_v19  ;;  %v1464_v27 = vpop.f32.mrf.mxu0  ;;  %v961_v49 = vmul.f32 %v1903_v36, %v1903_v36  ;;  %v870_v18 = vld [vmem:[%s1841_s9 + $0x88] sm:$0xff] }
  0xfd   : > { %v1492_v28 = vpop.f32.mrf.mxu1 }
  0xfe   : > { %903 = vadd.xlane.f32.xlu1 %v1876_v8  ;;  %v1900_v32 = vadd.f32 %v862_v26, %v810_v25  ;;  %v605_v33 = vpop.f32.mrf.mxu0  ;;  %v964_v37 = vmul.f32 %v1893_v24, %v1893_v24  ;;  %v831_v48 = vadd.f32 %v1492_v28, %v1464_v27 }
  0xff   : > { %v822_v34 = vpop.f32.mrf.mxu1 }
 0x100   : > { %901 = vadd.xlane.f32.xlu0 %v1879_v11  ;;  %v1465_v38 = vpop.f32.mrf.mxu0  ;;  %v962_v43 = vmul.f32 %v1900_v32, %v1900_v32  ;;  %v1921_v57 = vadd.f32 %v867_v50, %v831_v48  ;;  %v823_v58 = vadd.f32 %v822_v34, %v605_v33 }
 0x101   : > { %v1493_v39 = vpop.f32.mrf.mxu1 }
 0x102   : > { %987 = vadd.xlane.f32.xlu1 %v960_v12  ;;  %v834_v42 = vadd.f32 %v1493_v39, %v1465_v38  ;;  %v608_v46 = vpop.f32.mrf.mxu0  ;;  %v1928_v63 = vadd.f32 %v865_v59, %v823_v58  ;;  %v967_v4 = vmul.f32 %v1921_v57, %v1921_v57 }
 0x103   : > { %v825_v47 = vpop.f32.mrf.mxu1 }
 0x104   : > { %985 = vadd.xlane.f32.xlu0 %v959_v15  ;;  %v1918_v51 = vadd.f32 %v868_v45, %v834_v42  ;;  %v826_v53 = vadd.f32 %v825_v47, %v608_v46  ;;  %v1468_v55 = vpop.f32.mrf.mxu0  ;;  %v965_v14 = vmul.f32 %v1928_v63, %v1928_v63  ;;  %v871_v15 = vld [vmem:[%s1841_s9 + $0x90] sm:$0xff] }
 0x105   : > { %v1496_v56 = vpop.f32.mrf.mxu1 }
 0x106   : > { %983 = vadd.xlane.f32.xlu1 %v958_v17  ;;  %v1925_v60 = vadd.f32 %v866_v54, %v826_v53  ;;  %v621_v61 = vpop.f32.mrf.mxu0  ;;  %v968_v1 = vmul.f32 %v1918_v51, %v1918_v51  ;;  %v847_v13 = vadd.f32 %v1496_v56, %v1468_v55 }
 0x107   : > { %v838_v62 = vpop.f32.mrf.mxu1 }
 0x108   : > { %981 = vadd.xlane.f32.xlu0 %v957_v22  ;;  %v1469_v2 = vpop.f32.mrf.mxu0  ;;  %v966_v7 = vmul.f32 %v1925_v60, %v1925_v60  ;;  %v1945_v19 = vadd.f32 %v871_v15, %v847_v13  ;;  %v839_v20 = vadd.f32 %v838_v62, %v621_v61 }
 0x109   : > { %v1497_v3 = vpop.f32.mrf.mxu1 }
 0x10a   : > { %915 = vadd.xlane.f32.xlu1 %v1893_v24  ;;  %v850_v6 = vadd.f32 %v1497_v3, %v1469_v2  ;;  %v624_v10 = vpop.f32.mrf.mxu0  ;;  %v1952_v23 = vadd.f32 %v869_v21, %v839_v20  ;;  %v971_v28 = vmul.f32 %v1945_v19, %v1945_v19 }
 0x10b   : > { %v841_v12 = vpop.f32.mrf.mxu1 }
 0x10c   : > { %913 = vadd.xlane.f32.xlu0 %v1896_v29  ;;  %v1942_v16 = vadd.f32 %v872_v9, %v850_v6  ;;  %v842_v17 = vadd.f32 %v841_v12, %v624_v10  ;;  %v969_v26 = vmul.f32 %v1952_v23, %v1952_v23 }
 0x10e   : > { %911 = vadd.xlane.f32.xlu1 %v1900_v32  ;;  %v1949_v22 = vadd.f32 %v870_v18, %v842_v17  ;;  %v972_v27 = vmul.f32 %v1942_v16, %v1942_v16 }
 0x110   : > { %909 = vadd.xlane.f32.xlu0 %v1903_v36  ;;  %v970_v25 = vmul.f32 %v1949_v22, %v1949_v22 }
 0x112   : > { %995 = vadd.xlane.f32.xlu1 %v964_v37 }
 0x114   : > { %993 = vadd.xlane.f32.xlu0 %v963_v41 }
 0x116   : > { %991 = vadd.xlane.f32.xlu1 %v962_v43 }
 0x118   : > { %989 = vadd.xlane.f32.xlu0 %v961_v49 }
 0x11a   : > { %923 = vadd.xlane.f32.xlu1 %v1918_v51 }
 0x11c   : > { %921 = vadd.xlane.f32.xlu0 %v1921_v57 }
 0x11e   : > { %919 = vadd.xlane.f32.xlu1 %v1925_v60 }
 0x120   : > { %917 = vadd.xlane.f32.xlu0 %v1928_v63 }
 0x122   : > { %1003 = vadd.xlane.f32.xlu1 %v968_v1 }
 0x124   : > { %1001 = vadd.xlane.f32.xlu0 %v967_v4 }
 0x126   : > { %999 = vadd.xlane.f32.xlu1 %v966_v7 }
 0x128   : > { %997 = vadd.xlane.f32.xlu0 %v965_v14 }
 0x12a   : > { %931 = vadd.xlane.f32.xlu1 %v1942_v16 }
 0x12c   : > { %929 = vadd.xlane.f32.xlu0 %v1945_v19 }
 0x12e   : > { %927 = vadd.xlane.f32.xlu1 %v1949_v22 }
 0x130   : > { %925 = vadd.xlane.f32.xlu0 %v1952_v23 }
 0x132   : > { %1007 = vadd.xlane.f32.xlu1 %v970_v25 }
 0x134   : > { %1005 = vadd.xlane.f32.xlu0 %v969_v26 }
 0x136   : > { %1011 = vadd.xlane.f32.xlu1 %v972_v27 }
 0x138   : > { %1009 = vadd.xlane.f32.xlu0 %v971_v28 }
 0x173   : > { %v898_v30 = vpop.xlane.xlu1 %897 }
 0x174   : > { %v935_v33 = vmul.f32 0.0078125, %v898_v30 }
 0x175   : > { %v894_v31 = vpop.xlane.xlu0 %893 }
 0x176   : > { %v1035_v39 = vmul.f32 %v935_v33, %v935_v33  ;;  %v1966_v41 = vmul.f32 0.0078125, %v894_v31  ;;  %v1137_v28 = vsub.f32 %v1845_v35, %v935_v33 }
 0x177   : > { %v900_v34 = vpop.xlane.xlu1 %899 }
 0x178   : > { %v1964_v37 = vmul.f32 0.0078125, %v900_v34  ;;  %v1033_v49 = vmul.f32 %v1966_v41, %v1966_v41 }
 0x179   : > { %v978_v38 = vpop.xlane.xlu0 %977 }
 0x17a   : > { %v1015_v42 = vmul.f32 0.0078125, %v978_v38  ;;  %v1036_v45 = vmul.f32 %v1964_v37, %v1964_v37 }
 0x17b   : > { %v980_v43 = vpop.xlane.xlu1 %979 }
 0x17c   : > { %v1055_v46 = vsub.f32 %v1015_v42, %v1035_v39  ;;  %v1016_v47 = vmul.f32 0.0078125, %v980_v43  ;;  %v1138_v39 = vsub.f32 %v1851_v44, %v1964_v37  ;;  %v1992_v42 = vld [vmem:[%s2220_s5] ss:$0 sm:$0xff]  ;;  %v2003_v44 = vld [vmem:[%s2220_s5 + $0x1] ss:$0 sm:$0xff] }
 0x17d   : > { %v974_v48 = vpop.xlane.xlu0 %973 }
 0x17e   : > { %v1075_v50 = vmax.f32 %v1055_v46, 0.0  ;;  %v1056_v53 = vsub.f32 %v1016_v47, %v1036_v45  ;;  %v1013_v54 = vmul.f32 0.0078125, %v974_v48 }
 0x17f   : > { %v976_v55 = vpop.xlane.xlu1 %975 }
 0x180   : > { %v1095_v56 = vadd.f32 1e-05, %v1075_v50  ;;  %v1076_v58 = vmax.f32 %v1056_v53, 0.0  ;;  %v1053_v59 = vsub.f32 %v1013_v54, %v1033_v49  ;;  %v1014_v6 = vmul.f32 0.0078125, %v976_v55 }
 0x181   : > { %v896_v61 = vpop.xlane.xlu0 %895  ;;  %v1135_v49 = vsub.f32 %v1848_v40, %v1966_v41 }
 0x182   : > { %1567 = vrsqrt.f32 %v1095_v56  ;;  %v1096_v62 = vadd.f32 1e-05, %v1076_v58  ;;  %v1073_v1 = vmax.f32 %v1053_v59, 0.0  ;;  %v1972_v2 = vmul.f32 0.0078125, %v896_v61 }
 0x183   : > { %v908_v3 = vpop.xlane.xlu1 %907 }
 0x184   : > { %1569 = vrsqrt.f32 %v1096_v62  ;;  %v1093_v4 = vadd.f32 1e-05, %v1073_v1  ;;  %v1034_v7 = vmul.f32 %v1972_v2, %v1972_v2  ;;  %v1976_v14 = vmul.f32 0.0078125, %v908_v3 }
 0x185   : > { %v906_v9 = vpop.xlane.xlu0 %905 }
 0x186   : > { %1571 = vrsqrt.f32 %v1093_v4  ;;  %v1054_v10 = vsub.f32 %v1014_v6, %v1034_v7  ;;  %v1978_v18 = vmul.f32 0.0078125, %v906_v9  ;;  %v1040_v21 = vmul.f32 %v1976_v14, %v1976_v14 }
 0x187   : > { %v904_v12 = vpop.xlane.xlu1 %903 }
 0x188   : > { %v1074_v13 = vmax.f32 %v1054_v10, 0.0  ;;  %v1982_v26 = vmul.f32 0.0078125, %v904_v12  ;;  %v1039_v30 = vmul.f32 %v1978_v18, %v1978_v18 }
 0x189   : > { %v902_v15 = vpop.xlane.xlu0 %901 }
 0x18a   : > { %v1094_v17 = vadd.f32 1e-05, %v1074_v13  ;;  %v1996_v43 = vmul.f32 0.0078125, %v902_v15  ;;  %v1038_v37 = vmul.f32 %v1982_v26, %v1982_v26 }
 0x18b   : > { %v988_v20 = vpop.xlane.xlu1 %987 }
 0x18c   : > { %1573 = vrsqrt.f32 %v1094_v17  ;;  %v1020_v25 = vmul.f32 0.0078125, %v988_v20  ;;  %v1037_v59 = vmul.f32 %v1996_v43, %v1996_v43 }
 0x18d   : > { %v986_v27 = vpop.xlane.xlu0 %985 }
 0x18e   : > { %v1060_v31 = vsub.f32 %v1020_v25, %v1040_v21  ;;  %v1019_v34 = vmul.f32 0.0078125, %v986_v27  ;;  %v1136_v21 = vsub.f32 %v1858_v52, %v1972_v2 }
 0x18f   : > { %v1568_v38 = vpop.eup %1567  ;;  %v984_v45 = vpop.xlane.xlu1 %983 }
 0x190   : > { %v1157_v35 = vmul.f32 %v1568_v38, %v1137_v28  ;;  %v1080_v33 = vmax.f32 %v1060_v31, 0.0  ;;  %v1059_v46 = vsub.f32 %v1019_v34, %v1039_v30  ;;  %v1018_v47 = vmul.f32 0.0078125, %v984_v45 }
 0x191   : > { %v1570_v48 = vpop.eup %1569  ;;  %v982_v50 = vpop.xlane.xlu0 %981 }
 0x192   : > { %v1181_v53 = vmul.f32 %v1992_v42, %v1157_v35  ;;  %v1158_v54 = vmul.f32 %v1570_v48, %v1138_v39  ;;  %v1100_v55 = vadd.f32 1e-05, %v1080_v33  ;;  %v1079_v56 = vmax.f32 %v1059_v46, 0.0 }
 0x193   : > { %v1572_v58 = vpop.eup %1571  ;;  %v1058_v61 = vsub.f32 %v1018_v47, %v1038_v37  ;;  %v1017_v40 = vmul.f32 0.0078125, %v982_v50  ;;  %v916_v41 = vpop.xlane.xlu1 %915 }
 0x194   : > { %v1205_v62 = vadd.f32 %v2003_v44, %v1181_v53  ;;  %v1182_v1 = vmul.f32 %v1992_v42, %v1158_v54  ;;  %v1155_v3 = vmul.f32 %v1572_v58, %v1135_v49  ;;  %1575 = vrsqrt.f32 %v1100_v55 }
 0x195   : > { %v1099_v4 = vadd.f32 1e-05, %v1079_v56  ;;  %v1078_v6 = vmax.f32 %v1058_v61, 0.0  ;;  %v1057_v7 = vsub.f32 %v1017_v40, %v1037_v59  ;;  %v914_v9 = vpop.xlane.xlu0 %913  ;;  %v2021_v25 = vmul.f32 0.0078125, %v916_v41 }
 0x196   : > { %1225 = vst [vmem:[%s2012_s16 + $0x10] sm:$0xff] %v1205_v62  ;;  %v1206_v10 = vadd.f32 %v2003_v44, %v1182_v1  ;;  %v1179_v12 = vmul.f32 %v1992_v42, %v1155_v3  ;;  %v2024_v34 = vmul.f32 0.0078125, %v914_v9  ;;  %v1142_v49 = vsub.f32 %v1868_v0, %v1976_v14 }
 0x197   : > { %1577 = vrsqrt.f32 %v1099_v4  ;;  %v1098_v13 = vadd.f32 1e-05, %v1078_v6  ;;  %v1077_v15 = vmax.f32 %v1057_v7, 0.0  ;;  %v912_v17 = vpop.xlane.xlu1 %911  ;;  %v1044_v45 = vmul.f32 %v2021_v25, %v2021_v25 }
 0x198   : > { %1226 = vst [vmem:[%s2012_s16 + $0x18] sm:$0xff] %v1206_v10  ;;  %v1203_v20 = vadd.f32 %v2003_v44, %v1179_v12  ;;  %v2029_v35 = vmul.f32 0.0078125, %v912_v17  ;;  %v1043_v46 = vmul.f32 %v2024_v34, %v2024_v34  ;;  %v1141_v1 = vsub.f32 %v1872_v5, %v1978_v18 }
 0x199   : > { %v1574_v27 = vpop.eup %1573  ;;  %1579 = vrsqrt.f32 %v1098_v13  ;;  %v1097_v28 = vadd.f32 1e-05, %v1077_v15  ;;  %v910_v30 = vpop.xlane.xlu0 %909  ;;  %v1140_v10 = vsub.f32 %v1876_v8, %v1982_v26 }
 0x19a   : > { %1223 = vst [vmem:[%s2012_s16] sm:$0xff] %v1203_v20  ;;  %v1156_v31 = vmul.f32 %v1574_v27, %v1136_v21  ;;  %v2036_v37 = vmul.f32 0.0078125, %v910_v30  ;;  %v1042_v53 = vmul.f32 %v2029_v35, %v2029_v35  ;;  %v1139_v20 = vsub.f32 %v1879_v11, %v1996_v43 }
 0x19b   : > { %1581 = vrsqrt.f32 %v1097_v28  ;;  %v996_v38 = vpop.xlane.xlu1 %995 }
 0x19c   : > { %v1180_v39 = vmul.f32 %v1992_v42, %v1156_v31  ;;  %v1024_v52 = vmul.f32 0.0078125, %v996_v38  ;;  %v1041_v0 = vmul.f32 %v2036_v37, %v2036_v37 }
 0x19d   : > { %v994_v2 = vpop.xlane.xlu0 %993 }
 0x19e   : > { %v1204_v33 = vadd.f32 %v2003_v44, %v1180_v39  ;;  %v1064_v47 = vsub.f32 %v1024_v52, %v1044_v45  ;;  %v1023_v48 = vmul.f32 0.0078125, %v994_v2 }
 0x19f   : > { %v992_v50 = vpop.xlane.xlu1 %991 }
 0x1a0   : > { %1224 = vst [vmem:[%s2012_s16 + $0x8] sm:$0xff] %v1204_v33  ;;  %v1084_v54 = vmax.f32 %v1064_v47, 0.0  ;;  %v1063_v55 = vsub.f32 %v1023_v48, %v1043_v46  ;;  %v1022_v56 = vmul.f32 0.0078125, %v992_v50 }
 0x1a1   : > { %v1576_v58 = vpop.eup %1575  ;;  %v990_v59 = vpop.xlane.xlu0 %989 }
 0x1a2   : > { %v1162_v61 = vmul.f32 %v1576_v58, %v1142_v49  ;;  %v1104_v40 = vadd.f32 1e-05, %v1084_v54  ;;  %v1083_v41 = vmax.f32 %v1063_v55, 0.0  ;;  %v1062_v62 = vsub.f32 %v1022_v56, %v1042_v53 }
 0x1a3   : > { %v1021_v14 = vmul.f32 0.0078125, %v990_v59  ;;  %v924_v3 = vpop.xlane.xlu1 %923  ;;  %v1146_v59 = vsub.f32 %v1893_v24, %v2021_v25 }
 0x1a4   : > { %v1578_v4 = vpop.eup %1577  ;;  %v1186_v6 = vmul.f32 %v1992_v42, %v1162_v61  ;;  %1583 = vrsqrt.f32 %v1104_v40  ;;  %v1103_v7 = vadd.f32 1e-05, %v1083_v41  ;;  %v1082_v9 = vmax.f32 %v1062_v62, 0.0 }
 0x1a5   : > { %v1161_v12 = vmul.f32 %v1578_v4, %v1141_v1  ;;  %v1061_v13 = vsub.f32 %v1021_v14, %v1041_v0  ;;  %v922_v15 = vpop.xlane.xlu0 %921  ;;  %v2053_v8 = vmul.f32 0.0078125, %v924_v3  ;;  %v1145_v1 = vsub.f32 %v1896_v29, %v2024_v34 }
 0x1a6   : > { %v1580_v17 = vpop.eup %1579  ;;  %v1210_v5 = vadd.f32 %v2003_v44, %v1186_v6  ;;  %1585 = vrsqrt.f32 %v1103_v7  ;;  %v1102_v18 = vadd.f32 1e-05, %v1082_v9  ;;  %v2057_v11 = vmul.f32 0.0078125, %v922_v15 }
 0x1a7   : > { %v1185_v21 = vmul.f32 %v1992_v42, %v1161_v12  ;;  %v1160_v27 = vmul.f32 %v1580_v17, %v1140_v10  ;;  %v1081_v28 = vmax.f32 %v1061_v13, 0.0  ;;  %v920_v30 = vpop.xlane.xlu1 %919  ;;  %v1048_v48 = vmul.f32 %v2053_v8, %v2053_v8 }
 0x1a8   : > { %v1582_v31 = vpop.eup %1581  ;;  %1230 = vst [vmem:[%s2012_s16 + $0x38] sm:$0xff] %v1210_v5  ;;  %1587 = vrsqrt.f32 %v1102_v18  ;;  %v2062_v46 = vmul.f32 0.0078125, %v920_v30  ;;  %v1047_v53 = vmul.f32 %v2057_v11, %v2057_v11  ;;  %v1144_v10 = vsub.f32 %v1900_v32, %v2029_v35 }
 0x1a9   : > { %v1209_v26 = vadd.f32 %v2003_v44, %v1185_v21  ;;  %v1184_v38 = vmul.f32 %v1992_v42, %v1160_v27  ;;  %v1159_v39 = vmul.f32 %v1582_v31, %v1139_v20  ;;  %v1101_v45 = vadd.f32 1e-05, %v1081_v28  ;;  %v918_v52 = vpop.xlane.xlu0 %917 }
 0x1aa   : > { %v2071_v55 = vmul.f32 0.0078125, %v918_v52  ;;  %v1046_v61 = vmul.f32 %v2062_v46, %v2062_v46  ;;  %v1143_v35 = vsub.f32 %v1903_v36, %v2036_v37 }
 0x1ab   : > { %1229 = vst [vmem:[%s2012_s16 + $0x30] sm:$0xff] %v1209_v26  ;;  %v1208_v43 = vadd.f32 %v2003_v44, %v1184_v38  ;;  %v1183_v2 = vmul.f32 %v1992_v42, %v1159_v39  ;;  %1589 = vrsqrt.f32 %v1101_v45  ;;  %v1004_v33 = vpop.xlane.xlu1 %1003 }
 0x1ac   : > { %v1028_v49 = vmul.f32 0.0078125, %v1004_v33  ;;  %v1045_v24 = vmul.f32 %v2071_v55, %v2071_v55 }
 0x1ad   : > { %1228 = vst [vmem:[%s2012_s16 + $0x28] sm:$0xff] %v1208_v43  ;;  %v1207_v47 = vadd.f32 %v2003_v44, %v1183_v2  ;;  %v1002_v50 = vpop.xlane.xlu0 %1001 }
 0x1ae   : > { %v1027_v54 = vmul.f32 0.0078125, %v1002_v50  ;;  %v1068_v56 = vsub.f32 %v1028_v49, %v1048_v48 }
 0x1af   : > { %1227 = vst [vmem:[%s2012_s16 + $0x20] sm:$0xff] %v1207_v47  ;;  %v1000_v58 = vpop.xlane.xlu1 %999 }
 0x1b0   : > { %v1067_v40 = vsub.f32 %v1027_v54, %v1047_v53  ;;  %v1026_v41 = vmul.f32 0.0078125, %v1000_v58  ;;  %v1088_v0 = vmax.f32 %v1068_v56, 0.0 }
 0x1b1   : > { %v1584_v62 = vpop.eup %1583  ;;  %v998_v14 = vpop.xlane.xlu0 %997 }
 0x1b2   : > { %v1166_v3 = vmul.f32 %v1584_v62, %v1146_v59  ;;  %v1087_v4 = vmax.f32 %v1067_v40, 0.0  ;;  %v1066_v6 = vsub.f32 %v1026_v41, %v1046_v61  ;;  %v1025_v7 = vmul.f32 0.0078125, %v998_v14 }
 0x1b3   : > { %v1586_v9 = vpop.eup %1585  ;;  %v1108_v25 = vadd.f32 1e-05, %v1088_v0  ;;  %v932_v12 = vpop.xlane.xlu1 %931  ;;  %v1150_v0 = vsub.f32 %v1918_v51, %v2053_v8  ;;  %v1149_v14 = vsub.f32 %v1921_v57, %v2057_v11  ;;  %v1148_v51 = vsub.f32 %v1925_v60, %v2062_v46 }
 0x1b4   : > { %v1190_v13 = vmul.f32 %v1992_v42, %v1166_v3  ;;  %v1165_v15 = vmul.f32 %v1586_v9, %v1145_v1  ;;  %v1107_v29 = vadd.f32 1e-05, %v1087_v4  ;;  %v1086_v34 = vmax.f32 %v1066_v6, 0.0 }
 0x1b5   : > { %v1588_v17 = vpop.eup %1587  ;;  %1591 = vrsqrt.f32 %v1108_v25  ;;  %v1065_v5 = vsub.f32 %v1025_v7, %v1045_v24  ;;  %v930_v18 = vpop.xlane.xlu0 %929  ;;  %v2099_v47 = vmul.f32 0.0078125, %v932_v12 }
 0x1b6   : > { %v1214_v20 = vadd.f32 %v2003_v44, %v1190_v13  ;;  %v1189_v21 = vmul.f32 %v1992_v42, %v1165_v15  ;;  %v1164_v32 = vmul.f32 %v1588_v17, %v1144_v10  ;;  %1593 = vrsqrt.f32 %v1107_v29 }
 0x1b7   : > { %v1106_v27 = vadd.f32 1e-05, %v1086_v34  ;;  %v1085_v28 = vmax.f32 %v1065_v5, 0.0  ;;  %v928_v30 = vpop.xlane.xlu1 %927  ;;  %v2107_v59 = vmul.f32 0.0078125, %v930_v18  ;;  %v1052_v40 = vmul.f32 %v2099_v47, %v2099_v47 }
 0x1b8   : > { %v1590_v31 = vpop.eup %1589  ;;  %1234 = vst [vmem:[%s2012_s16 + $0x58] sm:$0xff] %v1214_v20  ;;  %v1213_v26 = vadd.f32 %v2003_v44, %v1189_v21  ;;  %v1188_v38 = vmul.f32 %v1992_v42, %v1164_v32  ;;  %v2091_v39 = vmul.f32 0.0078125, %v928_v30  ;;  %v1147_v5 = vsub.f32 %v1928_v63, %v2071_v55 }
 0x1b9   : > { %v1163_v45 = vmul.f32 %v1590_v31, %v1143_v35  ;;  %1595 = vrsqrt.f32 %v1106_v27  ;;  %v1105_v52 = vadd.f32 1e-05, %v1085_v28  ;;  %v926_v43 = vpop.xlane.xlu0 %925  ;;  %v1051_v12 = vmul.f32 %v2107_v59, %v2107_v59 }
 0x1ba   : > { %1233 = vst [vmem:[%s2012_s16 + $0x50] sm:$0xff] %v1213_v26  ;;  %v1212_v36 = vadd.f32 %v2003_v44, %v1188_v38  ;;  %v2096_v2 = vmul.f32 0.0078125, %v926_v43  ;;  %v1050_v48 = vmul.f32 %v2091_v39, %v2091_v39  ;;  %v1152_v55 = vsub.f32 %v1949_v22, %v2091_v39 }
 0x1bb   : > { %v1187_v37 = vmul.f32 %v1992_v42, %v1163_v45  ;;  %1597 = vrsqrt.f32 %v1105_v52  ;;  %v1008_v33 = vpop.xlane.xlu1 %1007  ;;  %v1154_v52 = vsub.f32 %v1942_v16, %v2099_v47 }
 0x1bc   : > { %1232 = vst [vmem:[%s2012_s16 + $0x48] sm:$0xff] %v1212_v36  ;;  %v1030_v49 = vmul.f32 0.0078125, %v1008_v33  ;;  %v1049_v54 = vmul.f32 %v2096_v2, %v2096_v2  ;;  %v1151_v26 = vsub.f32 %v1952_v23, %v2096_v2  ;;  %v1153_v23 = vsub.f32 %v1945_v19, %v2107_v59 }
 0x1bd   : > { %v1211_v50 = vadd.f32 %v2003_v44, %v1187_v37  ;;  %v1006_v53 = vpop.xlane.xlu0 %1005 }
 0x1be   : > { %v1070_v56 = vsub.f32 %v1030_v49, %v1050_v48  ;;  %v1029_v58 = vmul.f32 0.0078125, %v1006_v53 }
 0x1bf   : > { %1231 = vst [vmem:[%s2012_s16 + $0x40] sm:$0xff] %v1211_v50  ;;  %v1012_v61 = vpop.xlane.xlu1 %1011 }
 0x1c0   : > { %v1090_v41 = vmax.f32 %v1070_v56, 0.0  ;;  %v1069_v62 = vsub.f32 %v1029_v58, %v1049_v54  ;;  %v1032_v1 = vmul.f32 0.0078125, %v1012_v61 }
 0x1c1   : > { %v1010_v3 = vpop.xlane.xlu0 %1009 }
 0x1c2   : > { %v1592_v4 = vpop.eup %1591  ;;  %v1110_v6 = vadd.f32 1e-05, %v1090_v41  ;;  %v1089_v7 = vmax.f32 %v1069_v62, 0.0  ;;  %v1072_v9 = vsub.f32 %v1032_v1, %v1052_v40  ;;  %v1031_v10 = vmul.f32 0.0078125, %v1010_v3 }
 0x1c3   : > { %v1594_v24 = vpop.eup %1593  ;;  %v1170_v25 = vmul.f32 %v1592_v4, %v1150_v0 }
 0x1c4   : > { %v1169_v13 = vmul.f32 %v1594_v24, %v1149_v14  ;;  %1599 = vrsqrt.f32 %v1110_v6  ;;  %v1109_v15 = vadd.f32 1e-05, %v1089_v7  ;;  %v1092_v29 = vmax.f32 %v1072_v9, 0.0 }
 0x1c5   : > { %v1194_v57 = vmul.f32 %v1992_v42, %v1170_v25  ;;  %v1071_v8 = vsub.f32 %v1031_v10, %v1051_v12 }
 0x1c6   : > { %v1596_v11 = vpop.eup %1595  ;;  %v1193_v34 = vmul.f32 %v1992_v42, %v1169_v13  ;;  %1601 = vrsqrt.f32 %v1109_v15  ;;  %v1112_v17 = vadd.f32 1e-05, %v1092_v29 }
 0x1c7   : > { %v1218_v18 = vadd.f32 %v2003_v44, %v1194_v57  ;;  %v1168_v20 = vmul.f32 %v1596_v11, %v1148_v51  ;;  %v1091_v21 = vmax.f32 %v1071_v8, 0.0 }
 0x1c8   : > { %v1598_v32 = vpop.eup %1597  ;;  %v1217_v60 = vadd.f32 %v2003_v44, %v1193_v34  ;;  %1603 = vrsqrt.f32 %v1112_v17 }
 0x1c9   : > { %1238 = vst [vmem:[%s2012_s16 + $0x78] sm:$0xff] %v1218_v18  ;;  %v1192_v46 = vmul.f32 %v1992_v42, %v1168_v20  ;;  %v1167_v35 = vmul.f32 %v1598_v32, %v1147_v5  ;;  %v1111_v27 = vadd.f32 1e-05, %v1091_v21 }
 0x1ca   : > { %1237 = vst [vmem:[%s2012_s16 + $0x70] sm:$0xff] %v1217_v60 }
 0x1cb   : > { %v1216_v28 = vadd.f32 %v2003_v44, %v1192_v46  ;;  %v1191_v30 = vmul.f32 %v1992_v42, %v1167_v35  ;;  %1605 = vrsqrt.f32 %v1111_v27 }
 0x1cd   : > { %1236 = vst [vmem:[%s2012_s16 + $0x68] sm:$0xff] %v1216_v28  ;;  %v1215_v63 = vadd.f32 %v2003_v44, %v1191_v30 }
 0x1cf   : > { %1235 = vst [vmem:[%s2012_s16 + $0x60] sm:$0xff] %v1215_v63 }
 0x1d1   : > { %v1600_v31 = vpop.eup %1599 }
 0x1d2   : > { %v1172_v38 = vmul.f32 %v1600_v31, %v1152_v55 }
 0x1d3   : > { %v1602_v45 = vpop.eup %1601 }
 0x1d4   : > { %v1196_v43 = vmul.f32 %v1992_v42, %v1172_v38  ;;  %v1171_v36 = vmul.f32 %v1602_v45, %v1151_v26 }
 0x1d5   : > { %v1604_v37 = vpop.eup %1603 }
 0x1d6   : > { %v1220_v33 = vadd.f32 %v2003_v44, %v1196_v43  ;;  %v1195_v22 = vmul.f32 %v1992_v42, %v1171_v36  ;;  %v1174_v39 = vmul.f32 %v1604_v37, %v1154_v52 }
 0x1d8   : > { %v1606_v2 = vpop.eup %1605  ;;  %1240 = vst [vmem:[%s2012_s16 + $0x88] sm:$0xff] %v1220_v33  ;;  %v1219_v48 = vadd.f32 %v2003_v44, %v1195_v22  ;;  %v1198_v16 = vmul.f32 %v1992_v42, %v1174_v39 }
 0x1d9   : > { %v1173_v47 = vmul.f32 %v1606_v2, %v1153_v23 }
 0x1da   : > { %1239 = vst [vmem:[%s2012_s16 + $0x80] sm:$0xff] %v1219_v48  ;;  %v1222_v49 = vadd.f32 %v2003_v44, %v1198_v16 }
 0x1db   : > { %v1197_v50 = vmul.f32 %v1992_v42, %v1173_v47  ;;  %1250 = sbr.rel (!%p1745_p5) target bundleno = 507 (0x1fb), region = 48 }
 0x1dc   : > { %1242 = vst [vmem:[%s2012_s16 + $0x98] sm:$0xff] %v1222_v49 }
 0x1dd   : > { %v1221_v53 = vadd.f32 %v2003_v44, %v1197_v50 }
 0x1df   : > { %1241 = vst [vmem:[%s2012_s16 + $0x90] sm:$0xff] %v1221_v53 }
 0x1e0   : > { %s2229_s18 = smov (!%p1253_p11, %s1252_s18), 20 }
 0x1e1   : > { %s2160_s19 = sshll.u32 %s2229_s18, 7 }
 0x1e2   : > { %s1257_s26 = ssub.s32 2560, %s2160_s19 }
 0x1e3   : > { %1258 = vsyncadd %s2155_s17, %s1257_s26  ;;  %p1407_p12 = scmp.ne.s32.totalorder %s2160_s19, 0  ;;  %s1413_s28 = smul.u32 2560, %s1728_s25 }
 0x1e4   : > { %s1263_s29 = sshll.u32 %s2012_s16, 4  ;;  %s1669_s10 = smov [#allocation2]   ;;  %s2172_s29 = int_to_ptr.vmem [resolvable:$true] %s1263_s29 }
 0x1e5   : > { %s2170_s20 = scalar_lea.hbm %s2221_s6, %s1413_s28  ;;  %s1607_s11 = scalar_lea.vmem %s2172_s29, %s2160_s19 }
 0x1e6   : > { %p1608_p13 = scmp.ne.s32.totalorder %s2172_s29, %s1607_s11  ;;  %s1611_s12 = sshll.u32 %s1669_s10, 4  ;;  %s1612_s12 = int_to_ptr.vmem [resolvable:$false] %s1611_s12 }
 0x1e7   : > { %s1613_s25 = scalar_lea.vmem %s1612_s12, 5120  ;;  %p1614_p2 = scmp.lt.s32.totalorder %s2172_s29, %s1612_s12 }
 0x1e8   : > { %p1609_p0 = pnand %p1608_p13, %p1407_p12  ;;  %p1615_p3 = scmp.lt.s32.totalorder %s1613_s25, %s1607_s11 }
 0x1ea   : > { %p1610_p1 = pneg %p1609_p0  ;;  %p1616_p4 = por %p1615_p3, %p1614_p2 }
 0x1ec   : > { %p1617_p5 = pnand %p1616_p4, %p1610_p1 }
 0x1ee   : > { %1620 = shalt.err (!%p1617_p5)
}
 0x1ef   : > { %s1621_s13 = scalar_lea.hbm %s2170_s20, %s2160_s19  ;;  %s1625_s16 = scalar_lea.hbm %s2221_s6, 4864 }
 0x1f0   : > { %p1622_p7 = scmp.ne.s32.totalorder %s2170_s20, %s1621_s13  ;;  %p1626_p10 = scmp.lt.s32.totalorder %s2170_s20, %s2221_s6 }
 0x1f1   : > { %p1627_p11 = scmp.lt.s32.totalorder %s1625_s16, %s1621_s13 }
 0x1f2   : > { %p1623_p8 = pnand %p1622_p7, %p1407_p12 }
 0x1f3   : > { %p1628_p13 = por %p1627_p11, %p1626_p10 }
 0x1f4   : > { %p1624_p9 = pneg %p1623_p8 }
 0x1f6   : > { %p1629_p0 = pnand %p1628_p13, %p1624_p9 }
 0x1f8   : > { %1632 = shalt.err (!%p1629_p0)
}
 0x1f9   : > { %s1670_s28 = smov 128   ;;  %s1671_s7 = smov 8  }
 0x1fa   : > { %1269 = dma.vmem_to_hbm [thread:$0]  (%p1407_p12), %s2172_s29, %s2160_s19, %s2170_s20, %s2155_s17, %s1670_s28, %s1670_s28, %s1671_s7  }
 0x1fb PF: > { %p1504_p1 = scmp.ge.s32.totalorder %s1667_s24, 2  ;;  %s1278_s9 = sand.u32 1, %s1655_s21  }
 0x1fc   : > { %s1279_s11 = scalar_lea.sflag [#allocation3], %s1278_s9 }
 0x1fd   : > { %p1501_p2 = pnand %p1504_p1, %p1749_p6 }
 0x1ff   : > { %p1502_p3 = pneg %p1501_p2 }
 0x201   : > { %1650 = dma.done.wait (%p1502_p3), %s1279_s11, 2560  }
 0x202   : > { %1652 = vsyncadd (%p1502_p3), %s1279_s11, 4294964736  ;;  %p16_p4 = scmp.ge.s32.totalorder %s1732_s27, 4   ;;  %s2224_s21 = smov %s1659_s22 }
 0x203   : > { %s2225_s22 = smov %s1663_s23  ;;  %s2226_s23 = smov %s1743_s30 }
 0x204   : > { %s2227_s24 = smov %s1732_s27  ;;  %18 = sbr.rel (!%p16_p4) target bundleno = 3 (0x3), region = 85 }
 0x209   :  { %1284 = vsyncpa [#allocation3], 1 }
 0x20a   :  { %1286 = vsyncpa [#allocation3 + $0x1], 1 }

</bundles_post_ra>
